<compile_context>
chip_gen: v6e
topology: v6e:2x2x1
jax: 0.10.0
libtpu: 0.0.40
codegen_flags: <defaults>
</compile_context>

<pallas_src>
import jax
import jax.numpy as jnp
import numpy as np
from jax.experimental import pallas as pl
from jax.experimental.pallas import tpu as pltpu

COMPUTE_DTYPE = jnp.bfloat16   # MXU-native on v5e/v6e/v7x; accumulation stays f32.


def _round_up(x, m):
    return ((x + m - 1) // m) * m


def _vmem_capacity_bytes():
    """Physical per-core VMEM; conservative 64 MiB (v7x) fallback."""
    try:
        return int(pltpu.get_tpu_info().vmem_capacity_bytes)
    except Exception:
        return 64 * 1024 * 1024


def _vmem_working_set_bytes(tm, tk, H_pad, A_pad):
    """Estimated pipelined VMEM footprint for one tile choice."""
    w1 = 2 * tk * H_pad * 2          # double-buffered W1 K-slab (bf16)
    x = 2 * tm * tk * 2              # double-buffered x K-slab (bf16)
    acc = tm * H_pad * 4             # f32 accumulator scratch
    wp = H_pad * A_pad * 2           # single-buffered policy weights (bf16)
    b1 = H_pad * 4                   # single-buffered hidden bias (f32)
    bp = A_pad * 4                   # single-buffered policy bias (f32)
    out = 2 * tm * A_pad * 4         # double-buffered output tile (f32)
    return w1 + x + acc + wp + b1 + bp + out


def _choose_tiles(B, H_pad, A_pad):
    """Pick (tm, B_pad, tk, vmem_limit) from the chip's VMEM budget."""
    B_pad = _round_up(max(B, 1), 8)
    if B_pad > 128:
        # Large batch: cap the row tile so grid[0] >= 2 (megacore row split)
        # and the f32 accumulator stays bounded.
        tm = 128
        B_pad = _round_up(B_pad, tm)
    else:
        # Tiny batch: one row tile so W1 is streamed from HBM exactly once.
        tm = B_pad

    capacity = _vmem_capacity_bytes()
    vmem_limit = capacity * 3 // 4        # ~96 MiB on v5e/v6e, ~48 MiB on v7x
    budget = vmem_limit * 9 // 10

    # Largest multiple of 128 that divides H_pad, capped at 2048, fitting VMEM.
    tk = 128
    c = min(H_pad, 2048)
    c -= c % 128
    while c >= 128:
        if H_pad % c == 0 and _vmem_working_set_bytes(tm, c, H_pad, A_pad) <= budget:
            tk = c
            break
        c -= 128
    return tm, B_pad, tk, vmem_limit


# -----------------------------------------------------------------------------
# Fused kernel:
#   acc  += x_tile @ W1_tile                  (K-tiled, f32 accumulator)
#   on last K step:
#     h      = tanh(acc + b1)                 (f32)
#     logits = h @ Wp + bp                    (bf16 MXU, f32 accum)
#     probs  = softmax(logits)                (f32, EUP reciprocal + Newton)
# -----------------------------------------------------------------------------
def fused_last_token_policy_kernel(x_ref, w1_ref, b1_ref, wp_ref, bp_ref,
                                   o_ref, acc_ref):
    k = pl.program_id(1)

    @pl.when(k == 0)
    def _init():
        acc_ref[...] = jnp.zeros_like(acc_ref)

    acc_ref[...] += jnp.dot(x_ref[...], w1_ref[...],
                            preferred_element_type=jnp.float32)

    @pl.when(k == pl.num_programs(1) - 1)
    def _finalize():
        # Bias add + tanh only once per output tile (not per K step).
        h = jnp.tanh(acc_ref[...] + b1_ref[...])                      # (tm, H) f32
        logits = jnp.dot(h.astype(wp_ref.dtype), wp_ref[...],
                         preferred_element_type=jnp.float32) + bp_ref[...]
        m = jnp.max(logits, axis=-1, keepdims=True)
        e = jnp.exp(logits - m)                                       # padded lanes -> 0
        denom = jnp.sum(e, axis=-1, keepdims=True)
        inv = pl.reciprocal(denom, approx=True)                       # EUP slot
        inv = inv * (2.0 - denom * inv)                               # Newton -> f32 accuracy
        o_ref[...] = (e * inv).astype(o_ref.dtype)


def prepare_params(raw):
    """One-time parameter cast + pad (kept OUT of the per-step hot path).

    * everything MXU-facing is pre-cast to bf16
    * hidden dim padded to a multiple of 128 with zeros (zero pads contribute
      exactly 0 through both matmuls, and tanh(0+0)=0)
    * action dim padded to 128 lanes; padded bias lanes get -1e30 (kept in
      f32) so their softmax mass underflows to exactly 0
    """
    H = raw["w1"].shape[0]
    A = raw["wp"].shape[1]
    V = raw["embed"].shape[0]
    H_pad = _round_up(H, 128)
    A_pad = _round_up(A, 128)

    embed = jnp.zeros((V, H_pad), COMPUTE_DTYPE).at[:, :H].set(
        raw["embed"].astype(COMPUTE_DTYPE))
    w1 = jnp.zeros((H_pad, H_pad), COMPUTE_DTYPE).at[:H, :H].set(
        raw["w1"].astype(COMPUTE_DTYPE))
    b1 = jnp.zeros((1, H_pad), jnp.float32).at[:, :H].set(
        raw["b1"].reshape(1, H).astype(jnp.float32))
    wp = jnp.zeros((H_pad, A_pad), COMPUTE_DTYPE).at[:H, :A].set(
        raw["wp"].astype(COMPUTE_DTYPE))
    bp = jnp.full((1, A_pad), -1e30, jnp.float32).at[:, :A].set(
        raw["bp"].reshape(1, A).astype(jnp.float32))

    return {"embed": embed, "w1": w1, "b1": b1, "wp": wp, "bp": bp,
            "hidden_size": H, "num_actions": A}


def _build_policy_call(tm, tk, B_pad, H_pad, A_pad, vmem_limit,
                       single_buffer_invariants):
    if single_buffer_invariants:
        inv_kwargs = dict(pipeline_mode=pl.Buffered(1))   # grid-invariant: 1 buffer
    else:
        inv_kwargs = {}

    cost = pl.CostEstimate(
        flops=2 * B_pad * H_pad * H_pad + 2 * B_pad * H_pad * A_pad,
        transcendentals=B_pad * (H_pad + A_pad),
        bytes_accessed=(H_pad * H_pad * 2 + H_pad * A_pad * 2 +
                        B_pad * H_pad * 2 + B_pad * A_pad * 4 +
                        H_pad * 4 + A_pad * 4),
    )

    return pl.pallas_call(
        fused_last_token_policy_kernel,
        out_shape=jax.ShapeDtypeStruct((B_pad, A_pad), jnp.float32),
        grid_spec=pltpu.PrefetchScalarGridSpec(
            num_scalar_prefetch=0,
            grid=(B_pad // tm, H_pad // tk),
            in_specs=[
                pl.BlockSpec((tm, tk), lambda i, k: (i, k)),                  # x
                pl.BlockSpec((tk, H_pad), lambda i, k: (k, 0)),               # W1
                pl.BlockSpec((1, H_pad), lambda i, k: (0, 0), **inv_kwargs),  # b1
                pl.BlockSpec((H_pad, A_pad), lambda i, k: (0, 0), **inv_kwargs),  # Wp
                pl.BlockSpec((1, A_pad), lambda i, k: (0, 0), **inv_kwargs),  # bp
            ],
            out_specs=pl.BlockSpec((tm, A_pad), lambda i, k: (i, 0)),
            scratch_shapes=[pltpu.VMEM((tm, H_pad), jnp.float32)],
        ),
        compiler_params=pltpu.CompilerParams(
            dimension_semantics=("parallel", "arbitrary"),
            vmem_limit_bytes=int(vmem_limit)),
        cost_estimate=cost,
    )


def fused_last_token_policy(x_last, p):
    """x_last: (B, H_pad) bf16 (pre-cast / pre-padded); p: prepare_params()."""
    B = x_last.shape[0]
    H_pad = p["w1"].shape[0]
    A_pad = p["wp"].shape[1]
    A = p["num_actions"]

    tm, B_pad, tk, vmem_limit = _choose_tiles(B, H_pad, A_pad)

    if B_pad == B:
        x_p = x_last                      # already bf16 and 8-row aligned: no copy
    else:
        x_p = jnp.zeros((B_pad, H_pad), COMPUTE_DTYPE).at[:B, :].set(x_last)

    try:
        out = _build_policy_call(tm, tk, B_pad, H_pad, A_pad, vmem_limit,
                                 single_buffer_invariants=True)(
            x_p, p["w1"], p["b1"], p["wp"], p["bp"])
    except Exception:
        # pipeline_mode=pl.Buffered(1) unsupported on this jax build: fall back
        # to default double-buffering (same semantics, slightly more VMEM).
        out = _build_policy_call(tm, tk, B_pad, H_pad, A_pad, vmem_limit,
                                 single_buffer_invariants=False)(
            x_p, p["w1"], p["b1"], p["wp"], p["bp"])

    return out[:B, :A]


# -----------------------------------------------------------------------------
# Full forward, mirroring QwenWithPolicyHead.forward
# -----------------------------------------------------------------------------
def qwen_with_policy_head_forward(prepared_params, input_ids, attention_mask=None):
    # The PyTorch module slices hidden_states[:, -1, :] regardless of the mask,
    # so the last *positional* token is used here as well.
    # TODO(synk): the real pretrained Qwen transformer base model has no clean
    # single-kernel Pallas equivalent here; it is stood in by a deterministic
    # per-token embed -> dense -> tanh projection (so attention_mask is unused
    # and only the last token's row needs computing).
    last_ids = input_ids[:, -1]                                        # (B,)
    # TODO(synk): fuse this gather into the kernel via scalar-prefetched ids +
    # an in-kernel DMA gather to drop the extra XLA launch / HBM round-trip.
    x_last = jnp.take(prepared_params["embed"], last_ids, axis=0)      # (B, H_pad) bf16
    return fused_last_token_policy(x_last, prepared_params)


def _reference_forward(raw_params, input_ids):
    """Pure-JAX reference with identical bf16 casts, for validation."""
    cd = COMPUTE_DTYPE
    x = jnp.take(raw_params["embed"].astype(cd), input_ids[:, -1], axis=0)
    h = jnp.tanh(jnp.dot(x, raw_params["w1"].astype(cd),
                         preferred_element_type=jnp.float32)
                 + raw_params["b1"].astype(jnp.float32))
    logits = jnp.dot(h.astype(cd), raw_params["wp"].astype(cd),
                     preferred_element_type=jnp.float32) \
        + raw_params["bp"].astype(jnp.float32)
    return jax.nn.softmax(logits, axis=-1)


if __name__ == "__main__":
    # Small, deterministic shapes consistent with the forward pass.
    B, S = 2, 8            # batch, sequence length
    H = 32                 # hidden_size
    V = 64                 # vocab size (synthetic)
    A = 16                 # num_actions

    key = jax.random.PRNGKey(0)
    k_embed, k_w1, k_b1, k_wp, k_bp, k_ids = jax.random.split(key, 6)

    raw_params = {
        "embed": 0.02 * jax.random.normal(k_embed, (V, H), jnp.float32),
        "w1":    0.05 * jax.random.normal(k_w1, (H, H), jnp.float32),
        "b1":    0.01 * jax.random.normal(k_b1, (1, H), jnp.float32),
        # policy_head = nn.Linear(hidden_size, num_actions)
        "wp":    0.05 * jax.random.normal(k_wp, (H, A), jnp.float32),
        "bp":    0.01 * jax.random.normal(k_bp, (1, A), jnp.float32),
    }

    # One-time pad + bf16 cast (kept out of the per-call hot path).
    prepared = prepare_params(raw_params)

    input_ids = jax.random.randint(k_ids, (B, S), 0, V, dtype=jnp.int32)
    attention_mask = jnp.ones((B, S), dtype=jnp.int32)

    probs = qwen_with_policy_head_forward(prepared, input_ids, attention_mask)
    probs = jax.block_until_ready(probs)

    assert probs.shape == (B, A), probs.shape
    assert probs.dtype == jnp.float32

    row_sums = np.asarray(jnp.sum(probs, axis=-1))
    assert np.all(np.abs(row_sums - 1.0) < 1e-4), row_sums

    ref = np.asarray(_reference_forward(raw_params, input_ids))
    max_err = np.max(np.abs(np.asarray(probs) - ref))
    assert np.allclose(np.asarray(probs), ref, atol=2e-3), max_err

    print("KERNEL_OK")
</pallas_src>

<mosaic_0001>
module attributes {stable_mosaic.version = 11 : i64} {
  func.func @fused_last_token_policy_kernel(%arg0: i32, %arg1: i32, %arg2: memref<8x128xbf16, #tpu.memory_space<vmem>>, %arg3: memref<128x128xbf16, #tpu.memory_space<vmem>>, %arg4: memref<1x128xf32, #tpu.memory_space<vmem>>, %arg5: memref<128x128xbf16, #tpu.memory_space<vmem>>, %arg6: memref<1x128xf32, #tpu.memory_space<vmem>>, %arg7: memref<8x128xf32, #tpu.memory_space<vmem>>, %arg8: memref<8x128xf32, #tpu.memory_space<vmem>>) attributes {dimension_semantics = [#tpu.dimension_semantics<parallel>, #tpu.dimension_semantics<arbitrary>], iteration_bounds = array<i64: 1, 1>, scalar_prefetch = 0 : i64, scratch_operands = 1 : i64, tpu.core_type = #tpu.core_type<tc>, window_params = [{transform_indices = @transform_0, window_bounds = array<i64: 8, 128>}, {transform_indices = @transform_1, window_bounds = array<i64: 128, 128>}, {pipeline_mode = #tpu.pipeline_mode<synchronous>, transform_indices = @transform_2, window_bounds = array<i64: 1, 128>}, {pipeline_mode = #tpu.pipeline_mode<synchronous>, transform_indices = @transform_3, window_bounds = array<i64: 128, 128>}, {pipeline_mode = #tpu.pipeline_mode<synchronous>, transform_indices = @transform_4, window_bounds = array<i64: 1, 128>}, {transform_indices = @transform_5, window_bounds = array<i64: 8, 128>}]} {
    %c0_i32 = arith.constant 0 : i32
    %0 = arith.cmpi eq, %arg1, %c0_i32 : i32
    %1 = arith.extui %0 : i1 to i32
    %c0_i32_0 = arith.constant 0 : i32
    %2 = arith.cmpi ne, %1, %c0_i32_0 : i32
    scf.if %2 {
      %cst_10 = arith.constant 0.000000e+00 : f32
      %12 = vector.broadcast %cst_10 : f32 to vector<8x128xf32>
      %c0_11 = arith.constant 0 : index
      %c0_12 = arith.constant 0 : index
      %13 = vector.load %arg8[%c0_11, %c0_12] : memref<8x128xf32, #tpu.memory_space<vmem>>, vector<8x128xf32>
      tpu.vector_store %arg8[%c0_11, %c0_12], %12 {strides = array<i32>} : memref<8x128xf32, #tpu.memory_space<vmem>>, vector<8x128xf32>,
    } else {
    }
    %c0 = arith.constant 0 : index
    %c0_1 = arith.constant 0 : index
    %3 = vector.load %arg8[%c0, %c0_1] : memref<8x128xf32, #tpu.memory_space<vmem>>, vector<8x128xf32>
    %c0_2 = arith.constant 0 : index
    %c0_3 = arith.constant 0 : index
    %4 = vector.load %arg2[%c0_2, %c0_3] : memref<8x128xbf16, #tpu.memory_space<vmem>>, vector<8x128xbf16>
    %c0_4 = arith.constant 0 : index
    %c0_5 = arith.constant 0 : index
    %5 = vector.load %arg3[%c0_4, %c0_5] : memref<128x128xbf16, #tpu.memory_space<vmem>>, vector<128x128xbf16>
    %cst = arith.constant dense<0.000000e+00> : vector<8x128xf32>
    %6 = tpu.matmul %4, %5, %cst {dimension_numbers = #tpu.dot_dimension_numbers<[1], [0], [0], [1], [0, 0, 1, 1], [], []>} : vector<8x128xbf16>, vector<128x128xbf16>, vector<8x128xf32> -> vector<8x128xf32>
    %7 = arith.addf %3, %6 : vector<8x128xf32>
    %c0_6 = arith.constant 0 : index
    %c0_7 = arith.constant 0 : index
    %8 = vector.load %arg8[%c0_6, %c0_7] : memref<8x128xf32, #tpu.memory_space<vmem>>, vector<8x128xf32>
    tpu.vector_store %arg8[%c0_6, %c0_7], %7 {strides = array<i32>} : memref<8x128xf32, #tpu.memory_space<vmem>>, vector<8x128xf32>,
    %c0_i32_8 = arith.constant 0 : i32
    %9 = arith.cmpi eq, %arg1, %c0_i32_8 : i32
    %10 = arith.extui %9 : i1 to i32
    %c0_i32_9 = arith.constant 0 : i32
    %11 = arith.cmpi ne, %10, %c0_i32_9 : i32
    scf.if %11 {
      %c0_10 = arith.constant 0 : index
      %c0_11 = arith.constant 0 : index
      %12 = vector.load %arg8[%c0_10, %c0_11] : memref<8x128xf32, #tpu.memory_space<vmem>>, vector<8x128xf32>
      %c0_12 = arith.constant 0 : index
      %c0_13 = arith.constant 0 : index
      %13 = vector.load %arg4[%c0_12, %c0_13] : memref<1x128xf32, #tpu.memory_space<vmem>>, vector<1x128xf32>
      %14 = vector.broadcast %13 : vector<1x128xf32> to vector<8x128xf32>
      %15 = arith.addf %12, %14 : vector<8x128xf32>
      %16 = math.tanh %15 : vector<8x128xf32>
      %17 = arith.truncf %16 : vector<8x128xf32> to vector<8x128xbf16>
      %c0_14 = arith.constant 0 : index
      %c0_15 = arith.constant 0 : index
      %18 = vector.load %arg5[%c0_14, %c0_15] : memref<128x128xbf16, #tpu.memory_space<vmem>>, vector<128x128xbf16>
      %cst_16 = arith.constant dense<0.000000e+00> : vector<8x128xf32>
      %19 = tpu.matmul %17, %18, %cst_16 {dimension_numbers = #tpu.dot_dimension_numbers<[1], [0], [0], [1], [0, 0, 1, 1], [], []>} : vector<8x128xbf16>, vector<128x128xbf16>, vector<8x128xf32> -> vector<8x128xf32>
      %c0_17 = arith.constant 0 : index
      %c0_18 = arith.constant 0 : index
      %20 = vector.load %arg6[%c0_17, %c0_18] : memref<1x128xf32, #tpu.memory_space<vmem>>, vector<1x128xf32>
      %21 = vector.broadcast %20 : vector<1x128xf32> to vector<8x128xf32>
      %22 = arith.addf %19, %21 : vector<8x128xf32>
      %cst_19 = arith.constant dense<0xFF800000> : vector<8xf32>
      %23 = vector.multi_reduction <maximumf>, %22, %cst_19 [1] : vector<8x128xf32> to vector<8xf32>
      %24 = vector.shape_cast %23 : vector<8xf32> to vector<8x1xf32>
      %25 = vector.broadcast %24 : vector<8x1xf32> to vector<8x128xf32>
      %26 = arith.subf %22, %25 : vector<8x128xf32>
      %27 = math.exp %26 : vector<8x128xf32>
      %cst_20 = arith.constant dense<0.000000e+00> : vector<8xf32>
      %28 = vector.multi_reduction <add>, %27, %cst_20 [1] : vector<8x128xf32> to vector<8xf32>
      %29 = vector.shape_cast %28 : vector<8xf32> to vector<8x1xf32>
      %30 = tpu.reciprocal %29 {approx = true} : vector<8x1xf32> -> vector<8x1xf32>
      %31 = arith.mulf %29, %30 : vector<8x1xf32>
      %cst_21 = arith.constant 2.000000e+00 : f32
      %32 = vector.broadcast %cst_21 : f32 to vector<8x1xf32>
      %33 = arith.subf %32, %31 : vector<8x1xf32>
      %34 = arith.mulf %30, %33 : vector<8x1xf32>
      %35 = vector.broadcast %34 : vector<8x1xf32> to vector<8x128xf32>
      %36 = arith.mulf %27, %35 : vector<8x128xf32>
      %c0_22 = arith.constant 0 : index
      %c0_23 = arith.constant 0 : index
      %37 = vector.load %arg7[%c0_22, %c0_23] : memref<8x128xf32, #tpu.memory_space<vmem>>, vector<8x128xf32>
      tpu.vector_store %arg7[%c0_22, %c0_23], %36 {strides = array<i32>} : memref<8x128xf32, #tpu.memory_space<vmem>>, vector<8x128xf32>,
    } else {
    }
    return
  }
  func.func @transform_0(%arg0: i32, %arg1: i32) -> (i32, i32) {
    %c0_i32 = arith.constant 0 : i32
    return %arg0, %arg1 : i32, i32
  }
  func.func @transform_1(%arg0: i32, %arg1: i32) -> (i32, i32) {
    %c0_i32 = arith.constant 0 : i32
    %c0_i32_0 = arith.constant 0 : i32
    return %arg1, %c0_i32 : i32, i32
  }
  func.func @transform_2(%arg0: i32, %arg1: i32) -> (i32, i32) {
    %c0_i32 = arith.constant 0 : i32
    %c0_i32_0 = arith.constant 0 : i32
    %c0_i32_1 = arith.constant 0 : i32
    return %c0_i32, %c0_i32_0 : i32, i32
  }
  func.func @transform_3(%arg0: i32, %arg1: i32) -> (i32, i32) {
    %c0_i32 = arith.constant 0 : i32
    %c0_i32_0 = arith.constant 0 : i32
    %c0_i32_1 = arith.constant 0 : i32
    return %c0_i32, %c0_i32_0 : i32, i32
  }
  func.func @transform_4(%arg0: i32, %arg1: i32) -> (i32, i32) {
    %c0_i32 = arith.constant 0 : i32
    %c0_i32_0 = arith.constant 0 : i32
    %c0_i32_1 = arith.constant 0 : i32
    return %c0_i32, %c0_i32_0 : i32, i32
  }
  func.func @transform_5(%arg0: i32, %arg1: i32) -> (i32, i32) {
    %c0_i32 = arith.constant 0 : i32
    %c0_i32_0 = arith.constant 0 : i32
    return %arg0, %c0_i32 : i32, i32
  }
}

module attributes {stable_mosaic.version = 11 : i64} {
  func.func @fused_last_token_policy_kernel(%arg0: i32, %arg1: i32, %arg2: memref<8x128xbf16, #tpu.memory_space<vmem>>, %arg3: memref<128x128xbf16, #tpu.memory_space<vmem>>, %arg4: memref<1x128xf32, #tpu.memory_space<vmem>>, %arg5: memref<128x128xbf16, #tpu.memory_space<vmem>>, %arg6: memref<1x128xf32, #tpu.memory_space<vmem>>, %arg7: memref<8x128xf32, #tpu.memory_space<vmem>>, %arg8: memref<8x128xf32, #tpu.memory_space<vmem>>) attributes {dimension_semantics = [#tpu.dimension_semantics<parallel>, #tpu.dimension_semantics<arbitrary>], iteration_bounds = array<i64: 1, 1>, scalar_prefetch = 0 : i64, scratch_operands = 1 : i64, tpu.core_type = #tpu.core_type<tc>, window_params = [{transform_indices = @transform_0, window_bounds = array<i64: 8, 128>}, {transform_indices = @transform_1, window_bounds = array<i64: 128, 128>}, {pipeline_mode = #tpu.pipeline_mode<synchronous>, transform_indices = @transform_2, window_bounds = array<i64: 1, 128>}, {pipeline_mode = #tpu.pipeline_mode<synchronous>, transform_indices = @transform_3, window_bounds = array<i64: 128, 128>}, {pipeline_mode = #tpu.pipeline_mode<synchronous>, transform_indices = @transform_4, window_bounds = array<i64: 1, 128>}, {transform_indices = @transform_5, window_bounds = array<i64: 8, 128>}]} {
    %c0_i32 = arith.constant 0 : i32
    %0 = arith.cmpi eq, %arg1, %c0_i32 : i32
    %1 = arith.extui %0 : i1 to i32
    %c0_i32_0 = arith.constant 0 : i32
    %2 = arith.cmpi ne, %1, %c0_i32_0 : i32
    scf.if %2 {
      %cst_10 = arith.constant 0.000000e+00 : f32
      %12 = vector.broadcast %cst_10 : f32 to vector<8x128xf32>
      %c0_11 = arith.constant 0 : index
      %c0_12 = arith.constant 0 : index
      %13 = vector.load %arg8[%c0_11, %c0_12] : memref<8x128xf32, #tpu.memory_space<vmem>>, vector<8x128xf32>
      tpu.vector_store %arg8[%c0_11, %c0_12], %12 {strides = array<i32>} : memref<8x128xf32, #tpu.memory_space<vmem>>, vector<8x128xf32>,
    } else {
    }
    %c0 = arith.constant 0 : index
    %c0_1 = arith.constant 0 : index
    %3 = vector.load %arg8[%c0, %c0_1] : memref<8x128xf32, #tpu.memory_space<vmem>>, vector<8x128xf32>
    %c0_2 = arith.constant 0 : index
    %c0_3 = arith.constant 0 : index
    %4 = vector.load %arg2[%c0_2, %c0_3] : memref<8x128xbf16, #tpu.memory_space<vmem>>, vector<8x128xbf16>
    %c0_4 = arith.constant 0 : index
    %c0_5 = arith.constant 0 : index
    %5 = vector.load %arg3[%c0_4, %c0_5] : memref<128x128xbf16, #tpu.memory_space<vmem>>, vector<128x128xbf16>
    %cst = arith.constant dense<0.000000e+00> : vector<8x128xf32>
    %6 = tpu.matmul %4, %5, %cst {dimension_numbers = #tpu.dot_dimension_numbers<[1], [0], [0], [1], [0, 0, 1, 1], [], []>} : vector<8x128xbf16>, vector<128x128xbf16>, vector<8x128xf32> -> vector<8x128xf32>
    %7 = arith.addf %3, %6 : vector<8x128xf32>
    %c0_6 = arith.constant 0 : index
    %c0_7 = arith.constant 0 : index
    %8 = vector.load %arg8[%c0_6, %c0_7] : memref<8x128xf32, #tpu.memory_space<vmem>>, vector<8x128xf32>
    tpu.vector_store %arg8[%c0_6, %c0_7], %7 {strides = array<i32>} : memref<8x128xf32, #tpu.memory_space<vmem>>, vector<8x128xf32>,
    %c0_i32_8 = arith.constant 0 : i32
    %9 = arith.cmpi eq, %arg1, %c0_i32_8 : i32
    %10 = arith.extui %9 : i1 to i32
    %c0_i32_9 = arith.constant 0 : i32
    %11 = arith.cmpi ne, %10, %c0_i32_9 : i32
    scf.if %11 {
      %c0_10 = arith.constant 0 : index
      %c0_11 = arith.constant 0 : index
      %12 = vector.load %arg8[%c0_10, %c0_11] : memref<8x128xf32, #tpu.memory_space<vmem>>, vector<8x128xf32>
      %c0_12 = arith.constant 0 : index
      %c0_13 = arith.constant 0 : index
      %13 = vector.load %arg4[%c0_12, %c0_13] : memref<1x128xf32, #tpu.memory_space<vmem>>, vector<1x128xf32>
      %14 = vector.broadcast %13 : vector<1x128xf32> to vector<8x128xf32>
      %15 = arith.addf %12, %14 : vector<8x128xf32>
      %16 = math.tanh %15 : vector<8x128xf32>
      %17 = arith.truncf %16 : vector<8x128xf32> to vector<8x128xbf16>
      %c0_14 = arith.constant 0 : index
      %c0_15 = arith.constant 0 : index
      %18 = vector.load %arg5[%c0_14, %c0_15] : memref<128x128xbf16, #tpu.memory_space<vmem>>, vector<128x128xbf16>
      %cst_16 = arith.constant dense<0.000000e+00> : vector<8x128xf32>
      %19 = tpu.matmul %17, %18, %cst_16 {dimension_numbers = #tpu.dot_dimension_numbers<[1], [0], [0], [1], [0, 0, 1, 1], [], []>} : vector<8x128xbf16>, vector<128x128xbf16>, vector<8x128xf32> -> vector<8x128xf32>
      %c0_17 = arith.constant 0 : index
      %c0_18 = arith.constant 0 : index
      %20 = vector.load %arg6[%c0_17, %c0_18] : memref<1x128xf32, #tpu.memory_space<vmem>>, vector<1x128xf32>
      %21 = vector.broadcast %20 : vector<1x128xf32> to vector<8x128xf32>
      %22 = arith.addf %19, %21 : vector<8x128xf32>
      %cst_19 = arith.constant dense<0xFF800000> : vector<8xf32>
      %23 = vector.multi_reduction <maximumf>, %22, %cst_19 [1] : vector<8x128xf32> to vector<8xf32>
      %24 = vector.shape_cast %23 : vector<8xf32> to vector<8x1xf32>
      %25 = vector.broadcast %24 : vector<8x1xf32> to vector<8x128xf32>
      %26 = arith.subf %22, %25 : vector<8x128xf32>
      %27 = math.exp %26 : vector<8x128xf32>
      %cst_20 = arith.constant dense<0.000000e+00> : vector<8xf32>
      %28 = vector.multi_reduction <add>, %27, %cst_20 [1] : vector<8x128xf32> to vector<8xf32>
      %29 = vector.shape_cast %28 : vector<8xf32> to vector<8x1xf32>
      %30 = tpu.reciprocal %29 {approx = true} : vector<8x1xf32> -> vector<8x1xf32>
      %31 = arith.mulf %29, %30 : vector<8x1xf32>
      %cst_21 = arith.constant 2.000000e+00 : f32
      %32 = vector.broadcast %cst_21 : f32 to vector<8x1xf32>
      %33 = arith.subf %32, %31 : vector<8x1xf32>
      %34 = arith.mulf %30, %33 : vector<8x1xf32>
      %35 = vector.broadcast %34 : vector<8x1xf32> to vector<8x128xf32>
      %36 = arith.mulf %27, %35 : vector<8x128xf32>
      %c0_22 = arith.constant 0 : index
      %c0_23 = arith.constant 0 : index
      %37 = vector.load %arg7[%c0_22, %c0_23] : memref<8x128xf32, #tpu.memory_space<vmem>>, vector<8x128xf32>
      tpu.vector_store %arg7[%c0_22, %c0_23], %36 {strides = array<i32>} : memref<8x128xf32, #tpu.memory_space<vmem>>, vector<8x128xf32>,
    } else {
    }
    return
  }
  func.func @transform_0(%arg0: i32, %arg1: i32) -> (i32, i32) {
    %c0_i32 = arith.constant 0 : i32
    return %arg0, %arg1 : i32, i32
  }
  func.func @transform_1(%arg0: i32, %arg1: i32) -> (i32, i32) {
    %c0_i32 = arith.constant 0 : i32
    %c0_i32_0 = arith.constant 0 : i32
    return %arg1, %c0_i32 : i32, i32
  }
  func.func @transform_2(%arg0: i32, %arg1: i32) -> (i32, i32) {
    %c0_i32 = arith.constant 0 : i32
    %c0_i32_0 = arith.constant 0 : i32
    %c0_i32_1 = arith.constant 0 : i32
    return %c0_i32, %c0_i32_0 : i32, i32
  }
  func.func @transform_3(%arg0: i32, %arg1: i32) -> (i32, i32) {
    %c0_i32 = arith.constant 0 : i32
    %c0_i32_0 = arith.constant 0 : i32
    %c0_i32_1 = arith.constant 0 : i32
    return %c0_i32, %c0_i32_0 : i32, i32
  }
  func.func @transform_4(%arg0: i32, %arg1: i32) -> (i32, i32) {
    %c0_i32 = arith.constant 0 : i32
    %c0_i32_0 = arith.constant 0 : i32
    %c0_i32_1 = arith.constant 0 : i32
    return %c0_i32, %c0_i32_0 : i32, i32
  }
  func.func @transform_5(%arg0: i32, %arg1: i32) -> (i32, i32) {
    %c0_i32 = arith.constant 0 : i32
    %c0_i32_0 = arith.constant 0 : i32
    return %arg0, %c0_i32 : i32, i32
  }
}

</mosaic_0001>

<bundles_post_ra>
// kernel: tpu_custom_call.1
= control target key start
LH: loop header
LB: loop body
LE: loop exit
PB: predicated region body
PF: predicated region fallthrough
CT: control target
= control target key end

     0   :  { %10 = vsyncpa [#allocation4], 0  ;;  %s576_s0 = inlined_call_operand.hbm [shape: bf16[8,128], index: 0, kind: input, shape index: {}]   ;;  %s577_s1 = inlined_call_operand.hbm [shape: bf16[128,128], index: 1, kind: input, shape index: {}]   ;;  %s578_s2 = inlined_call_operand.vmem [shape: f32[1,128], index: 2, kind: input, shape index: {}]   ;;  %s579_s3 = inlined_call_operand.hbm [shape: bf16[128,128], index: 3, kind: input, shape index: {}]   ;;  %s580_s4 = inlined_call_operand.vmem [shape: f32[1,128], index: 4, kind: input, shape index: {}]   ;;  %s581_s5 = inlined_call_operand.hbm [shape: f32[8,128], index: 5, kind: output, shape index: {}]  }
   0x1   :  { %11 = vsyncpa [#allocation7], 0 }
   0x2   :  { %12 = vsyncpa [#allocation5], 0  ;;  %s520_s18 = smov [#allocation6]  }
   0x3   :  { %s28_s19 = sshll.u32 %s520_s18, 4  ;;  %s29_s19 = int_to_ptr.vmem [resolvable:$true] %s28_s19 }
   0x4   :  { %s442_s20 = scalar_lea.vmem %s29_s19, 1024  ;;  %p447_p1 = scmp.lt.s32.totalorder %s29_s19, %s29_s19 }
   0x5   :  { %p443_p0 = scmp.ne.s32.totalorder %s29_s19, %s442_s20  ;;  %p448_p2 = scmp.lt.s32.totalorder %s442_s20, %s442_s20 }
   0x7   :  { %p449_p3 = por %p448_p2, %p447_p1 }
   0x9   :  { %p450_p4 = pnand %p449_p3, %p443_p0 }
   0xb   :  { %453 = shalt.err (!%p450_p4)
}
   0xc   :  { %s521_s21 = smov 64   ;;  %s522_s22 = smov 4  }
   0xd   :  { %34 = dma.hbm_to_vmem [thread:$0]  %s577_s1, 1024, %s29_s19, [#allocation7], %s521_s21, %s521_s21, %s522_s22  }
   0xe   :  { %s523_s25 = smov [#allocation3]   ;;  %s524_s27 = smov [#allocation8]  }
   0xf   :  { %s19_s26 = sshll.u32 %s523_s25, 4  ;;  %s42_s28 = sshll.u32 %s524_s27, 4  ;;  %s20_s26 = int_to_ptr.vmem [resolvable:$true] %s19_s26  ;;  %s43_s28 = int_to_ptr.vmem [resolvable:$true] %s42_s28 }
  0x10   :  { %s462_s29 = scalar_lea.vmem %s20_s26, 64  ;;  %p467_p6 = scmp.lt.s32.totalorder %s20_s26, %s20_s26 }
  0x11   :  { %p463_p5 = scmp.ne.s32.totalorder %s20_s26, %s462_s29  ;;  %p468_p7 = scmp.lt.s32.totalorder %s462_s29, %s462_s29 }
  0x13   :  { %p469_p8 = por %p468_p7, %p467_p6 }
  0x15   :  { %p470_p9 = pnand %p469_p8, %p463_p5 }
  0x17   :  { %473 = shalt.err (!%p470_p9)
}
  0x18   :  { %22 = dma.hbm_to_vmem [thread:$0]  %s576_s0, 64, %s20_s26, [#allocation4]  }
  0x19   :  { %s482_s7 = scalar_lea.vmem %s43_s28, 1024  ;;  %p487_p11 = scmp.lt.s32.totalorder %s43_s28, %s43_s28 }
  0x1a   :  { %p483_p10 = scmp.ne.s32.totalorder %s43_s28, %s482_s7  ;;  %p488_p12 = scmp.lt.s32.totalorder %s482_s7, %s482_s7 }
  0x1c   :  { %p489_p13 = por %p488_p12, %p487_p11 }
  0x1e   :  { %p490_p0 = pnand %p489_p13, %p483_p10 }
  0x20   :  { %493 = shalt.err (!%p490_p0)
}
  0x21   :  { %48 = dma.hbm_to_vmem [thread:$0]  %s579_s3, 1024, %s43_s28, [#allocation7], %s521_s21, %s521_s21, %s522_s22  }
  0x22   :  { %514 = dma.done.wait [#allocation4], 64  }
  0x23   :  { %515 = vsyncadd [#allocation4], 4294967232 }
  0x24   :  { %516 = dma.done.wait [#allocation7], 2048  }
  0x25   :  { %517 = vsyncadd [#allocation7], 4294965248  ;;  %v525_v0 = vmov 0.0   ;;  %vm526_vm0 = vmmov 0   ;;  %v412_v1 = vld [vmem:[#allocation6 + $0x38] sm:$0xff]   ;;  %v413_v2 = vld [vmem:[#allocation6 + $0x30] sm:$0xff]  }
  0x26   :  { %364 = vmatprep.subr.bf16.mxu0 %v525_v0  ;;  %380 = vmatprep.mubr.msk.bf16.mxu0 %vm526_vm0, %v525_v0  ;;  %v414_v3 = vld [vmem:[#allocation6 + $0x28] sm:$0xff]   ;;  %v420_v4 = vld [vmem:[#allocation8 + $0x38] sm:$0xff]   ;;  %v415_v5 = vld [vmem:[#allocation6 + $0x20] sm:$0xff]  }
  0x27   :  { %384 = vmatprep.subr.bf16.mxu1 %v525_v0  ;;  %400 = vmatprep.mubr.msk.bf16.mxu1 %vm526_vm0, %v525_v0  ;;  %v421_v6 = vld [vmem:[#allocation8 + $0x30] sm:$0xff]   ;;  %v416_v7 = vld [vmem:[#allocation6 + $0x18] sm:$0xff]   ;;  %v422_v8 = vld [vmem:[#allocation8 + $0x28] sm:$0xff]  }
  0x28   :  { %365 = vmatpush3.bf16.msra.mxu0 %v412_v1  ;;  %385 = vmatpush3.bf16.msra.mxu1 %v420_v4  ;;  %v417_v9 = vld [vmem:[#allocation6 + $0x10] sm:$0xff]   ;;  %v418_v10 = vld [vmem:[#allocation6 + $0x8] sm:$0xff]   ;;  %v419_v11 = vld [vmem:[#allocation6] sm:$0xff]  }
  0x29   :  { %366 = vmatprep.subr.bf16.mxu0 %v525_v0  ;;  %386 = vmatprep.subr.bf16.mxu1 %v525_v0  ;;  %v67_v12 = vld [vmem:[#allocation3] sm:$0xf]  ;;  %v423_v13 = vld [vmem:[#allocation8 + $0x20] sm:$0xff]   ;;  %v425_v15 = vld [vmem:[#allocation8 + $0x10] sm:$0xff]  }
  0x2a   :  { %v424_v14 = vld [vmem:[#allocation8 + $0x18] sm:$0xff]   ;;  %v426_v16 = vld [vmem:[#allocation8 + $0x8] sm:$0xff]   ;;  %v427_v17 = vld [vmem:[#allocation8] sm:$0xff]  }
  0x2b   :  { %v336_v18 = vld [vmem:[%s578_s2] ss:$0 sm:$0xff]  ;;  %s527_s2 = smov [#allocation9]  }
  0x2c   :  { %367 = vmatpush3.bf16.msra.mxu0 %v413_v2  ;;  %387 = vmatpush3.bf16.msra.mxu1 %v421_v6  ;;  %v337_v26 = vld [vmem:[%s580_s4] ss:$0 sm:$0xff]  ;;  %s318_s11 = sshll.u32 %s527_s2, 4  ;;  %s319_s11 = int_to_ptr.vmem [resolvable:$true] %s318_s11 }
  0x2d   :  { %368 = vmatprep.subr.bf16.mxu0 %v525_v0  ;;  %388 = vmatprep.subr.bf16.mxu1 %v525_v0  ;;  %s494_s4 = scalar_lea.vmem %s319_s11, 128  ;;  %p499_p2 = scmp.lt.s32.totalorder %s319_s11, %s319_s11 }
  0x2e   :  { %p495_p1 = scmp.ne.s32.totalorder %s319_s11, %s494_s4  ;;  %p500_p3 = scmp.lt.s32.totalorder %s494_s4, %s494_s4 }
  0x30   :  { %369 = vmatpush3.bf16.msra.mxu0 %v414_v3  ;;  %389 = vmatpush3.bf16.msra.mxu1 %v422_v8  ;;  %p501_p4 = por %p500_p3, %p499_p2 }
  0x31   :  { %370 = vmatprep.subr.bf16.mxu0 %v525_v0  ;;  %390 = vmatprep.subr.bf16.mxu1 %v525_v0 }
  0x32   :  { %p502_p5 = pnand %p501_p4, %p495_p1 }
  0x34   :  { %371 = vmatpush3.bf16.msra.mxu0 %v415_v5  ;;  %391 = vmatpush3.bf16.msra.mxu1 %v423_v13 }
  0x35   :  { %372 = vmatprep.subr.bf16.mxu0 %v525_v0  ;;  %392 = vmatprep.subr.bf16.mxu1 %v525_v0 }
  0x38   :  { %373 = vmatpush3.bf16.msra.mxu0 %v416_v7  ;;  %393 = vmatpush3.bf16.msra.mxu1 %v424_v14 }
  0x39   :  { %374 = vmatprep.subr.bf16.mxu0 %v525_v0  ;;  %394 = vmatprep.subr.bf16.mxu1 %v525_v0 }
  0x3c   :  { %375 = vmatpush3.bf16.msra.mxu0 %v417_v9  ;;  %395 = vmatpush3.bf16.msra.mxu1 %v425_v15 }
  0x3d   :  { %376 = vmatprep.subr.bf16.mxu0 %v525_v0  ;;  %396 = vmatprep.subr.bf16.mxu1 %v525_v0 }
  0x40   :  { %377 = vmatpush3.bf16.msra.mxu0 %v418_v10  ;;  %397 = vmatpush3.bf16.msra.mxu1 %v426_v16 }
  0x41   :  { %378 = vmatprep.subr.bf16.mxu0 %v525_v0  ;;  %398 = vmatprep.subr.bf16.mxu1 %v525_v0 }
  0x44   :  { %379 = vmatpush3.bf16.msra.mxu0 %v419_v11  ;;  %399 = vmatpush3.bf16.msra.mxu1 %v427_v17 }
  0x47   :  { %381 = vmatmul.mubr.bf16.vlgmr.msra.gmra.mxu0 %v67_v12 }
 0x107   :  { %v166_v19 = vpop.f32.mrf.mxu0 }
 0x108   :  { %v185_v20 = vadd.f32 %v336_v18, %v166_v19 }
 0x109   :  { %v382_v21 = vpop.f32.mrf.mxu0 }
 0x10a   :  { %428 = vtanh.f32 %v185_v20 }
 0x10b   :  { %v169_v22 = vpop.f32.mrf.mxu0 }
 0x10d   :  { %v383_v23 = vpop.f32.mrf.mxu0 }
 0x117   :  { %v429_v24 = vpop.eup %428 }
 0x118   :  { %v187_v25 = vpack.c.bf16 %v429_v24, %v429_v24 }
 0x11a   :  { %401 = vmatmul.mubr.bf16.vlgmr.msra.gmra.mxu1 %v187_v25 }
 0x1da   :  { %v293_v27 = vpop.f32.mrf.mxu1 }
 0x1db   :  { %v294_v28 = vadd.f32 %v337_v26, %v293_v27 }
 0x1dc   :  { %v402_v29 = vpop.f32.mrf.mxu1 }
 0x1dd   :  { %299 = vmax.xlane.f32.xlu0 %v294_v28 }
 0x1de   :  { %v296_v30 = vpop.f32.mrf.mxu1 }
 0x1e0   :  { %v403_v31 = vpop.f32.mrf.mxu1 }
 0x266   :  { %v300_v32 = vpop.xlane.xlu0 %299 }
 0x267   :  { %v301_v33 = vsub.f32 %v294_v28, %v300_v32 }
 0x269   :  { %v302_v34 = vmul.f32 1.442695, %v301_v33 }
 0x26b   :  { %430 = vpow2.f32 %v302_v34 }
 0x278   :  { %v431_v35 = vpop.eup %430 }
 0x279   :  { %304 = vadd.xlane.f32.xlu0 %v431_v35 }
 0x302   :  { %v305_v36 = vpop.xlane.xlu0 %304 }
 0x303   :  { %432 = vrcp.f32 %v305_v36 }
 0x310   :  { %v433_v37 = vpop.eup %432 }
 0x311   :  { %v307_v38 = vmul.f32 %v433_v37, %v305_v36 }
 0x313   :  { %v308_v39 = vsub.f32 2.0, %v307_v38 }
 0x315   :  { %v309_v40 = vmul.f32 %v433_v37, %v308_v39 }
 0x317   :  { %v310_v41 = vmul.f32 %v431_v35, %v309_v40 }
 0x319   :  { %311 = vst [vmem:[#allocation9] sm:$0xff] %v310_v41 }
 0x31a   :  { %505 = shalt.err (!%p502_p5)
}
 0x31b   :  { %321 = dma.vmem_to_hbm [thread:$0]  %s319_s11, 128, %s581_s5, [#allocation5]  }
 0x31c   :  { %518 = dma.done.wait [#allocation5], 128  }
 0x31d   :  { %519 = vsyncadd [#allocation5], 4294967168 }
 0x31e   :  { %325 = vsyncpa [#allocation4], 1 }
 0x31f   :  { %326 = vsyncpa [#allocation7], 1 }
 0x320   :  { %327 = vsyncpa [#allocation5], 1 }

// kernel: tpu_custom_call.1
= control target key start
LH: loop header
LB: loop body
LE: loop exit
PB: predicated region body
PF: predicated region fallthrough
CT: control target
= control target key end

     0   :  { %10 = vsyncpa [#allocation4], 0  ;;  %s576_s0 = inlined_call_operand.hbm [shape: bf16[8,128], index: 0, kind: input, shape index: {}]   ;;  %s577_s1 = inlined_call_operand.hbm [shape: bf16[128,128], index: 1, kind: input, shape index: {}]   ;;  %s578_s2 = inlined_call_operand.vmem [shape: f32[1,128], index: 2, kind: input, shape index: {}]   ;;  %s579_s3 = inlined_call_operand.hbm [shape: bf16[128,128], index: 3, kind: input, shape index: {}]   ;;  %s580_s4 = inlined_call_operand.vmem [shape: f32[1,128], index: 4, kind: input, shape index: {}]   ;;  %s581_s5 = inlined_call_operand.hbm [shape: f32[8,128], index: 5, kind: output, shape index: {}]  }
   0x1   :  { %11 = vsyncpa [#allocation7], 0 }
   0x2   :  { %12 = vsyncpa [#allocation5], 0  ;;  %s520_s18 = smov [#allocation6]  }
   0x3   :  { %s28_s19 = sshll.u32 %s520_s18, 4  ;;  %s29_s19 = int_to_ptr.vmem [resolvable:$true] %s28_s19 }
   0x4   :  { %s442_s20 = scalar_lea.vmem %s29_s19, 1024  ;;  %p447_p1 = scmp.lt.s32.totalorder %s29_s19, %s29_s19 }
   0x5   :  { %p443_p0 = scmp.ne.s32.totalorder %s29_s19, %s442_s20  ;;  %p448_p2 = scmp.lt.s32.totalorder %s442_s20, %s442_s20 }
   0x7   :  { %p449_p3 = por %p448_p2, %p447_p1 }
   0x9   :  { %p450_p4 = pnand %p449_p3, %p443_p0 }
   0xb   :  { %453 = shalt.err (!%p450_p4)
}
   0xc   :  { %s521_s21 = smov 64   ;;  %s522_s22 = smov 4  }
   0xd   :  { %34 = dma.hbm_to_vmem [thread:$0]  %s577_s1, 1024, %s29_s19, [#allocation7], %s521_s21, %s521_s21, %s522_s22  }
   0xe   :  { %s523_s25 = smov [#allocation3]   ;;  %s524_s27 = smov [#allocation8]  }
   0xf   :  { %s19_s26 = sshll.u32 %s523_s25, 4  ;;  %s42_s28 = sshll.u32 %s524_s27, 4  ;;  %s20_s26 = int_to_ptr.vmem [resolvable:$true] %s19_s26  ;;  %s43_s28 = int_to_ptr.vmem [resolvable:$true] %s42_s28 }
  0x10   :  { %s462_s29 = scalar_lea.vmem %s20_s26, 64  ;;  %p467_p6 = scmp.lt.s32.totalorder %s20_s26, %s20_s26 }
  0x11   :  { %p463_p5 = scmp.ne.s32.totalorder %s20_s26, %s462_s29  ;;  %p468_p7 = scmp.lt.s32.totalorder %s462_s29, %s462_s29 }
  0x13   :  { %p469_p8 = por %p468_p7, %p467_p6 }
  0x15   :  { %p470_p9 = pnand %p469_p8, %p463_p5 }
  0x17   :  { %473 = shalt.err (!%p470_p9)
}
  0x18   :  { %22 = dma.hbm_to_vmem [thread:$0]  %s576_s0, 64, %s20_s26, [#allocation4]  }
  0x19   :  { %s482_s7 = scalar_lea.vmem %s43_s28, 1024  ;;  %p487_p11 = scmp.lt.s32.totalorder %s43_s28, %s43_s28 }
  0x1a   :  { %p483_p10 = scmp.ne.s32.totalorder %s43_s28, %s482_s7  ;;  %p488_p12 = scmp.lt.s32.totalorder %s482_s7, %s482_s7 }
  0x1c   :  { %p489_p13 = por %p488_p12, %p487_p11 }
  0x1e   :  { %p490_p0 = pnand %p489_p13, %p483_p10 }
  0x20   :  { %493 = shalt.err (!%p490_p0)
}
  0x21   :  { %48 = dma.hbm_to_vmem [thread:$0]  %s579_s3, 1024, %s43_s28, [#allocation7], %s521_s21, %s521_s21, %s522_s22  }
  0x22   :  { %514 = dma.done.wait [#allocation4], 64  }
  0x23   :  { %515 = vsyncadd [#allocation4], 4294967232 }
  0x24   :  { %516 = dma.done.wait [#allocation7], 2048  }
  0x25   :  { %517 = vsyncadd [#allocation7], 4294965248  ;;  %v525_v0 = vmov 0.0   ;;  %vm526_vm0 = vmmov 0   ;;  %v412_v1 = vld [vmem:[#allocation6 + $0x38] sm:$0xff]   ;;  %v413_v2 = vld [vmem:[#allocation6 + $0x30] sm:$0xff]  }
  0x26   :  { %364 = vmatprep.subr.bf16.mxu0 %v525_v0  ;;  %380 = vmatprep.mubr.msk.bf16.mxu0 %vm526_vm0, %v525_v0  ;;  %v414_v3 = vld [vmem:[#allocation6 + $0x28] sm:$0xff]   ;;  %v420_v4 = vld [vmem:[#allocation8 + $0x38] sm:$0xff]   ;;  %v415_v5 = vld [vmem:[#allocation6 + $0x20] sm:$0xff]  }
  0x27   :  { %384 = vmatprep.subr.bf16.mxu1 %v525_v0  ;;  %400 = vmatprep.mubr.msk.bf16.mxu1 %vm526_vm0, %v525_v0  ;;  %v421_v6 = vld [vmem:[#allocation8 + $0x30] sm:$0xff]   ;;  %v416_v7 = vld [vmem:[#allocation6 + $0x18] sm:$0xff]   ;;  %v422_v8 = vld [vmem:[#allocation8 + $0x28] sm:$0xff]  }
  0x28   :  { %365 = vmatpush3.bf16.msra.mxu0 %v412_v1  ;;  %385 = vmatpush3.bf16.msra.mxu1 %v420_v4  ;;  %v417_v9 = vld [vmem:[#allocation6 + $0x10] sm:$0xff]   ;;  %v418_v10 = vld [vmem:[#allocation6 + $0x8] sm:$0xff]   ;;  %v419_v11 = vld [vmem:[#allocation6] sm:$0xff]  }
  0x29   :  { %366 = vmatprep.subr.bf16.mxu0 %v525_v0  ;;  %386 = vmatprep.subr.bf16.mxu1 %v525_v0  ;;  %v67_v12 = vld [vmem:[#allocation3] sm:$0xf]  ;;  %v423_v13 = vld [vmem:[#allocation8 + $0x20] sm:$0xff]   ;;  %v425_v15 = vld [vmem:[#allocation8 + $0x10] sm:$0xff]  }
  0x2a   :  { %v424_v14 = vld [vmem:[#allocation8 + $0x18] sm:$0xff]   ;;  %v426_v16 = vld [vmem:[#allocation8 + $0x8] sm:$0xff]   ;;  %v427_v17 = vld [vmem:[#allocation8] sm:$0xff]  }
  0x2b   :  { %v336_v18 = vld [vmem:[%s578_s2] ss:$0 sm:$0xff]  ;;  %s527_s2 = smov [#allocation9]  }
  0x2c   :  { %367 = vmatpush3.bf16.msra.mxu0 %v413_v2  ;;  %387 = vmatpush3.bf16.msra.mxu1 %v421_v6  ;;  %v337_v26 = vld [vmem:[%s580_s4] ss:$0 sm:$0xff]  ;;  %s318_s11 = sshll.u32 %s527_s2, 4  ;;  %s319_s11 = int_to_ptr.vmem [resolvable:$true] %s318_s11 }
  0x2d   :  { %368 = vmatprep.subr.bf16.mxu0 %v525_v0  ;;  %388 = vmatprep.subr.bf16.mxu1 %v525_v0  ;;  %s494_s4 = scalar_lea.vmem %s319_s11, 128  ;;  %p499_p2 = scmp.lt.s32.totalorder %s319_s11, %s319_s11 }
  0x2e   :  { %p495_p1 = scmp.ne.s32.totalorder %s319_s11, %s494_s4  ;;  %p500_p3 = scmp.lt.s32.totalorder %s494_s4, %s494_s4 }
  0x30   :  { %369 = vmatpush3.bf16.msra.mxu0 %v414_v3  ;;  %389 = vmatpush3.bf16.msra.mxu1 %v422_v8  ;;  %p501_p4 = por %p500_p3, %p499_p2 }
  0x31   :  { %370 = vmatprep.subr.bf16.mxu0 %v525_v0  ;;  %390 = vmatprep.subr.bf16.mxu1 %v525_v0 }
  0x32   :  { %p502_p5 = pnand %p501_p4, %p495_p1 }
  0x34   :  { %371 = vmatpush3.bf16.msra.mxu0 %v415_v5  ;;  %391 = vmatpush3.bf16.msra.mxu1 %v423_v13 }
  0x35   :  { %372 = vmatprep.subr.bf16.mxu0 %v525_v0  ;;  %392 = vmatprep.subr.bf16.mxu1 %v525_v0 }
  0x38   :  { %373 = vmatpush3.bf16.msra.mxu0 %v416_v7  ;;  %393 = vmatpush3.bf16.msra.mxu1 %v424_v14 }
  0x39   :  { %374 = vmatprep.subr.bf16.mxu0 %v525_v0  ;;  %394 = vmatprep.subr.bf16.mxu1 %v525_v0 }
  0x3c   :  { %375 = vmatpush3.bf16.msra.mxu0 %v417_v9  ;;  %395 = vmatpush3.bf16.msra.mxu1 %v425_v15 }
  0x3d   :  { %376 = vmatprep.subr.bf16.mxu0 %v525_v0  ;;  %396 = vmatprep.subr.bf16.mxu1 %v525_v0 }
  0x40   :  { %377 = vmatpush3.bf16.msra.mxu0 %v418_v10  ;;  %397 = vmatpush3.bf16.msra.mxu1 %v426_v16 }
  0x41   :  { %378 = vmatprep.subr.bf16.mxu0 %v525_v0  ;;  %398 = vmatprep.subr.bf16.mxu1 %v525_v0 }
  0x44   :  { %379 = vmatpush3.bf16.msra.mxu0 %v419_v11  ;;  %399 = vmatpush3.bf16.msra.mxu1 %v427_v17 }
  0x47   :  { %381 = vmatmul.mubr.bf16.vlgmr.msra.gmra.mxu0 %v67_v12 }
 0x107   :  { %v166_v19 = vpop.f32.mrf.mxu0 }
 0x108   :  { %v185_v20 = vadd.f32 %v336_v18, %v166_v19 }
 0x109   :  { %v382_v21 = vpop.f32.mrf.mxu0 }
 0x10a   :  { %428 = vtanh.f32 %v185_v20 }
 0x10b   :  { %v169_v22 = vpop.f32.mrf.mxu0 }
 0x10d   :  { %v383_v23 = vpop.f32.mrf.mxu0 }
 0x117   :  { %v429_v24 = vpop.eup %428 }
 0x118   :  { %v187_v25 = vpack.c.bf16 %v429_v24, %v429_v24 }
 0x11a   :  { %401 = vmatmul.mubr.bf16.vlgmr.msra.gmra.mxu1 %v187_v25 }
 0x1da   :  { %v293_v27 = vpop.f32.mrf.mxu1 }
 0x1db   :  { %v294_v28 = vadd.f32 %v337_v26, %v293_v27 }
 0x1dc   :  { %v402_v29 = vpop.f32.mrf.mxu1 }
 0x1dd   :  { %299 = vmax.xlane.f32.xlu0 %v294_v28 }
 0x1de   :  { %v296_v30 = vpop.f32.mrf.mxu1 }
 0x1e0   :  { %v403_v31 = vpop.f32.mrf.mxu1 }
 0x266   :  { %v300_v32 = vpop.xlane.xlu0 %299 }
 0x267   :  { %v301_v33 = vsub.f32 %v294_v28, %v300_v32 }
 0x269   :  { %v302_v34 = vmul.f32 1.442695, %v301_v33 }
 0x26b   :  { %430 = vpow2.f32 %v302_v34 }
 0x278   :  { %v431_v35 = vpop.eup %430 }
 0x279   :  { %304 = vadd.xlane.f32.xlu0 %v431_v35 }
 0x302   :  { %v305_v36 = vpop.xlane.xlu0 %304 }
 0x303   :  { %432 = vrcp.f32 %v305_v36 }
 0x310   :  { %v433_v37 = vpop.eup %432 }
 0x311   :  { %v307_v38 = vmul.f32 %v433_v37, %v305_v36 }
 0x313   :  { %v308_v39 = vsub.f32 2.0, %v307_v38 }
 0x315   :  { %v309_v40 = vmul.f32 %v433_v37, %v308_v39 }
 0x317   :  { %v310_v41 = vmul.f32 %v431_v35, %v309_v40 }
 0x319   :  { %311 = vst [vmem:[#allocation9] sm:$0xff] %v310_v41 }
 0x31a   :  { %505 = shalt.err (!%p502_p5)
}
 0x31b   :  { %321 = dma.vmem_to_hbm [thread:$0]  %s319_s11, 128, %s581_s5, [#allocation5]  }
 0x31c   :  { %518 = dma.done.wait [#allocation5], 128  }
 0x31d   :  { %519 = vsyncadd [#allocation5], 4294967168 }
 0x31e   :  { %325 = vsyncpa [#allocation4], 1 }
 0x31f   :  { %326 = vsyncpa [#allocation7], 1 }
 0x320   :  { %327 = vsyncpa [#allocation5], 1 }

</bundles_post_ra>
